<compile_context>
chip_gen: v7x
topology: tpu7x:2x2x1
jax: 0.10.0
libtpu: 0.0.40
codegen_flags: <defaults>
</compile_context>

<pallas_src>
import functools

import jax
import jax.numpy as jnp
from jax.experimental import pallas as pl
from jax.experimental.pallas import tpu as pltpu


def _mha_kernel(x_ref, k_ref, v_ref, wq_ref, bq_ref, wfc_ref, bfc_ref,
                out_ref, attn_ref=None, *, n_head, d_k, d_v, inv_temperature):
    x_q = x_ref[0]                                                    # (TQ, d_model) f32

    # Fused Q projection (bf16 MXU, f32 accumulate), temperature folded into Q.
    q_all = jnp.dot(x_q.astype(jnp.bfloat16), wq_ref[...],
                    preferred_element_type=jnp.float32) + bq_ref[...]
    q_all = (q_all * inv_temperature).astype(jnp.bfloat16)           # (TQ, H*d_k)

    head_outs = []
    for h in range(n_head):                                           # small static loop
        q_h = q_all[:, h * d_k:(h + 1) * d_k]                         # (TQ, d_k) bf16
        k_h = k_ref[h, 0]                                             # (L, d_k) bf16 view
        v_h = v_ref[h, 0]                                             # (L, d_v) bf16 view

        # scores = q_h @ k_h^T  (contract over d_k, no explicit transpose)
        scores = jax.lax.dot_general(
            q_h, k_h, (((1,), (1,)), ((), ())),
            preferred_element_type=jnp.float32)                       # (TQ, L) f32

        # Softmax in f32 (mask=None path); cast to bf16 immediately after normalize.
        m = jnp.max(scores, axis=-1, keepdims=True)
        e = jnp.exp(scores - m)
        inv_den = pl.reciprocal(jnp.sum(e, axis=-1, keepdims=True), approx=True)
        attn_bf = (e * inv_den).astype(jnp.bfloat16)                  # (TQ, L) bf16
        if attn_ref is not None:
            attn_ref[h, 0] = attn_bf.astype(attn_ref.dtype)

        head_outs.append(jnp.dot(attn_bf, v_h,
                                 preferred_element_type=jnp.float32))  # (TQ, d_v) f32

    # Lane-dense fc: concat heads -> (TQ, H*d_v), one matmul with (H*d_v, d_model).
    concat = jnp.concatenate(head_outs, axis=-1).astype(jnp.bfloat16)
    contrib = jnp.dot(concat, wfc_ref[...],
                      preferred_element_type=jnp.float32)             # (TQ, d_model) f32

    out_ref[0] = x_q + contrib + bfc_ref[...]                         # residual in f32


def prepare_mha_params(params, n_head, d_k, d_v):
    """One-time (load-time) rearrangement of PyTorch-layout Linear params."""
    d_model = params["fc_w"].shape[0]
    return {
        "wq": params["w_qs_w"].T.astype(jnp.bfloat16),                  # (d_model, H*d_k)
        "bq": params["w_qs_b"].reshape(1, n_head * d_k).astype(jnp.float32),
        "wk": params["w_ks_w"].T.astype(jnp.bfloat16),                  # (d_model, H*d_k)
        "bk": params["w_ks_b"].reshape(1, n_head * d_k).astype(jnp.float32),
        "wv": params["w_vs_w"].T.astype(jnp.bfloat16),                  # (d_model, H*d_v)
        "bv": params["w_vs_b"].reshape(1, n_head * d_v).astype(jnp.float32),
        "wfc": params["fc_w"].T.astype(jnp.bfloat16),                   # (H*d_v, d_model)
        "bfc": params["fc_b"].reshape(1, d_model).astype(jnp.float32),
    }


def _project_kv(x, prepared, n_head, d_k, d_v):
    """One fused dense matmul per sequence; output head-major bf16 (H, B, L, d)."""
    B, L, _ = x.shape
    xb = x.astype(jnp.bfloat16)
    k = jnp.dot(xb, prepared["wk"], preferred_element_type=jnp.float32) + prepared["bk"]
    v = jnp.dot(xb, prepared["wv"], preferred_element_type=jnp.float32) + prepared["bv"]
    k = k.reshape(B, L, n_head, d_k).transpose(2, 0, 1, 3).astype(jnp.bfloat16)
    v = v.reshape(B, L, n_head, d_v).transpose(2, 0, 1, 3).astype(jnp.bfloat16)
    return k, v


def _vmem_capacity_bytes():
    try:
        return int(pltpu.get_tpu_info().vmem_capacity_bytes)
    except Exception:
        return 64 * 1024 * 1024   # conservative fallback (v7x per-TensorCore VMEM)


def _select_tq(L, tq_max, fixed_bytes, per_row_bytes, budget_bytes):
    cands = [t for t in range(8, min(L, tq_max) + 1, 8) if L % t == 0]
    if not cands:
        # TODO(synk): L with no multiple-of-8 divisor falls back to an untiled block.
        return L
    best = cands[0]
    for t in cands:                                    # pick the largest tile that fits
        if fixed_bytes + t * per_row_bytes <= budget_bytes:
            best = t
    return best


def multi_head_attention(x, prepared, n_head, d_k, d_v, *, tq_max=512,
                         return_attn=True, attn_dtype=jnp.bfloat16):
    """x: (B, L, d_model) f32.

    Returns (output (B, L, d_model) f32, attn (n_head*B, L, L) attn_dtype or None).
    """
    B, L, d_model = x.shape
    Hdk, Hdv = n_head * d_k, n_head * d_v
    inv_temp = 1.0 / (float(d_model) ** 0.5)

    # K/V projected once per sequence in XLA (near-roofline dense matmul), head-major.
    k, v = _project_kv(x, prepared, n_head, d_k, d_v)

    # --- Device-derived VMEM budgeting ------------------------------------------------
    cap = _vmem_capacity_bytes()
    attn_bytes = jnp.dtype(attn_dtype).itemsize if return_attn else 0
    # TQ-invariant, double-buffered pipeline blocks (K, V, weights, biases).
    fixed = 2 * (L * Hdk * 2 + L * Hdv * 2
                 + d_model * Hdk * 2 + Hdk * 4
                 + Hdv * d_model * 2 + d_model * 4)
    # Bytes per query row: x/out/attn blocks (x2 buffers) + in-kernel f32 temporaries.
    per_row = (2 * (2 * d_model * 4 + n_head * L * attn_bytes)
               + 3 * L * 4
               + 6 * (Hdk + Hdv) + 4 * d_model)
    TQ = _select_tq(L, tq_max, fixed, per_row, int(0.75 * cap))
    num_q = L // TQ
    vmem_est = fixed + TQ * per_row
    vmem_limit = min(int(0.9 * cap), max(2 * vmem_est, 32 * 1024 * 1024))

    kernel = functools.partial(_mha_kernel, n_head=n_head, d_k=d_k, d_v=d_v,
                               inv_temperature=inv_temp)

    in_specs = [
        pl.BlockSpec((1, TQ, d_model), lambda b, qi: (b, qi, 0)),      # x (query tile)
        pl.BlockSpec((n_head, 1, L, d_k), lambda b, qi: (0, b, 0, 0)),  # K (head-major)
        pl.BlockSpec((n_head, 1, L, d_v), lambda b, qi: (0, b, 0, 0)),  # V (head-major)
        pl.BlockSpec((d_model, Hdk), lambda b, qi: (0, 0)),            # wq (bf16)
        pl.BlockSpec((1, Hdk), lambda b, qi: (0, 0)),                  # bq
        pl.BlockSpec((Hdv, d_model), lambda b, qi: (0, 0)),            # wfc (bf16)
        pl.BlockSpec((1, d_model), lambda b, qi: (0, 0)),              # bfc
    ]
    out_spec_o = pl.BlockSpec((1, TQ, d_model), lambda b, qi: (b, qi, 0))
    if return_attn:
        out_shape = (
            jax.ShapeDtypeStruct((B, L, d_model), jnp.float32),
            jax.ShapeDtypeStruct((n_head, B, L, L), attn_dtype),
        )
        out_specs = (
            out_spec_o,
            pl.BlockSpec((n_head, 1, TQ, L), lambda b, qi: (0, b, qi, 0)),
        )
    else:
        out_shape = jax.ShapeDtypeStruct((B, L, d_model), jnp.float32)
        out_specs = out_spec_o

    f = pl.pallas_call(
        kernel,
        out_shape=out_shape,
        grid_spec=pltpu.PrefetchScalarGridSpec(
            num_scalar_prefetch=0,
            grid=(B, num_q),
            in_specs=in_specs,
            out_specs=out_specs,
        ),
        compiler_params=pltpu.CompilerParams(
            dimension_semantics=("parallel", "parallel"),
            vmem_limit_bytes=vmem_limit),
    )
    args = (x, k, v, prepared["wq"], prepared["bq"], prepared["wfc"], prepared["bfc"])
    if return_attn:
        out, attn4 = f(*args)
        # (H, B, L, L) -> (H*B, L, L): head-major batch, matching torch's layout.
        return out, attn4.reshape(n_head * B, L, L)
    out = f(*args)
    return out, None


def _reference(x, params, n_head, d_k, d_v):
    """Pure-JAX mirror of the PyTorch forward (dropout=0, mask=None), f32."""
    B, L, d_model = x.shape
    temp = float(d_model) ** 0.5
    q = (x @ params["w_qs_w"].T + params["w_qs_b"]).reshape(B, L, n_head, d_k)
    k = (x @ params["w_ks_w"].T + params["w_ks_b"]).reshape(B, L, n_head, d_k)
    v = (x @ params["w_vs_w"].T + params["w_vs_b"]).reshape(B, L, n_head, d_v)
    q = q.transpose(2, 0, 1, 3).reshape(-1, L, d_k)
    k = k.transpose(2, 0, 1, 3).reshape(-1, L, d_k)
    v = v.transpose(2, 0, 1, 3).reshape(-1, L, d_v)
    attn = jnp.einsum("bqd,bkd->bqk", q, k) / temp
    attn = jax.nn.softmax(attn, axis=2)
    out = jnp.einsum("bqk,bkd->bqd", attn, v)
    out = out.reshape(n_head, B, L, d_v).transpose(1, 2, 0, 3).reshape(B, L, -1)
    out = out @ params["fc_w"].T + params["fc_b"]
    return out + x, attn


if __name__ == "__main__":
    # Small, deterministic setup.
    B, L, d_model = 2, 8, 32
    n_head, d_k, d_v = 2, 16, 16

    key = jax.random.PRNGKey(0)
    ks = jax.random.split(key, 9)
    scale = 0.1
    params = {
        "w_qs_w": scale * jax.random.normal(ks[0], (n_head * d_k, d_model), jnp.float32),
        "w_qs_b": scale * jax.random.normal(ks[1], (n_head * d_k,), jnp.float32),
        "w_ks_w": scale * jax.random.normal(ks[2], (n_head * d_k, d_model), jnp.float32),
        "w_ks_b": scale * jax.random.normal(ks[3], (n_head * d_k,), jnp.float32),
        "w_vs_w": scale * jax.random.normal(ks[4], (n_head * d_v, d_model), jnp.float32),
        "w_vs_b": scale * jax.random.normal(ks[5], (n_head * d_v,), jnp.float32),
        "fc_w": scale * jax.random.normal(ks[6], (d_model, n_head * d_v), jnp.float32),
        "fc_b": scale * jax.random.normal(ks[7], (d_model,), jnp.float32),
    }
    x = jax.random.normal(ks[8], (B, L, d_model), jnp.float32)

    # Weight rearrangement hoisted out of the call path (done once at load time).
    prepared = prepare_mha_params(params, n_head, d_k, d_v)

    out, attn = multi_head_attention(x, prepared, n_head, d_k, d_v)
    out = jax.block_until_ready(out)
    attn = jax.block_until_ready(attn)

    ref_out, ref_attn = _reference(x, params, n_head, d_k, d_v)
    assert out.shape == (B, L, d_model)
    assert attn.shape == (n_head * B, L, L)
    # bf16 MXU operands, bf16 attention weights, approx reciprocal -> relaxed tolerances.
    assert jnp.allclose(out, ref_out, atol=2e-2, rtol=2e-2)
    assert jnp.allclose(attn.astype(jnp.float32), ref_attn, atol=1e-2, rtol=1e-2)

    print("KERNEL_OK")
</pallas_src>

<mosaic_0001>
module attributes {stable_mosaic.version = 11 : i64} {
  func.func @_mha_kernel(%arg0: i32, %arg1: i32, %arg2: memref<1x8x32xf32, #tpu.memory_space<vmem>>, %arg3: memref<2x1x8x16xbf16, #tpu.memory_space<vmem>>, %arg4: memref<2x1x8x16xbf16, #tpu.memory_space<vmem>>, %arg5: memref<32x32xbf16, #tpu.memory_space<vmem>>, %arg6: memref<1x32xf32, #tpu.memory_space<vmem>>, %arg7: memref<32x32xbf16, #tpu.memory_space<vmem>>, %arg8: memref<1x32xf32, #tpu.memory_space<vmem>>, %arg9: memref<1x8x32xf32, #tpu.memory_space<vmem>>, %arg10: memref<2x1x8x8xbf16, #tpu.memory_space<vmem>>) attributes {dimension_semantics = [#tpu.dimension_semantics<parallel>, #tpu.dimension_semantics<parallel>], iteration_bounds = array<i64: 2, 1>, scalar_prefetch = 0 : i64, scratch_operands = 0 : i64, tpu.core_type = #tpu.core_type<tc>, window_params = [{transform_indices = @transform_0, window_bounds = array<i64: 1, 8, 32>}, {transform_indices = @transform_1, window_bounds = array<i64: 2, 1, 8, 16>}, {transform_indices = @transform_2, window_bounds = array<i64: 2, 1, 8, 16>}, {pipeline_mode = #tpu.pipeline_mode<synchronous>, transform_indices = @transform_3, window_bounds = array<i64: 32, 32>}, {pipeline_mode = #tpu.pipeline_mode<synchronous>, transform_indices = @transform_4, window_bounds = array<i64: 1, 32>}, {pipeline_mode = #tpu.pipeline_mode<synchronous>, transform_indices = @transform_5, window_bounds = array<i64: 32, 32>}, {pipeline_mode = #tpu.pipeline_mode<synchronous>, transform_indices = @transform_6, window_bounds = array<i64: 1, 32>}, {transform_indices = @transform_7, window_bounds = array<i64: 1, 8, 32>}, {transform_indices = @transform_8, window_bounds = array<i64: 2, 1, 8, 8>}]} {
    %c0 = arith.constant 0 : index
    %c0_0 = arith.constant 0 : index
    %c0_1 = arith.constant 0 : index
    %0 = vector.load %arg2[%c0, %c0_0, %c0_1] : memref<1x8x32xf32, #tpu.memory_space<vmem>>, vector<1x8x32xf32>
    %1 = vector.shape_cast %0 : vector<1x8x32xf32> to vector<8x32xf32>
    %2 = arith.truncf %1 : vector<8x32xf32> to vector<8x32xbf16>
    %c0_2 = arith.constant 0 : index
    %c0_3 = arith.constant 0 : index
    %3 = vector.load %arg5[%c0_2, %c0_3] : memref<32x32xbf16, #tpu.memory_space<vmem>>, vector<32x32xbf16>
    %cst = arith.constant dense<0.000000e+00> : vector<8x32xf32>
    %4 = tpu.matmul %2, %3, %cst {dimension_numbers = #tpu.dot_dimension_numbers<[1], [0], [0], [1], [0, 0, 1, 1], [], []>} : vector<8x32xbf16>, vector<32x32xbf16>, vector<8x32xf32> -> vector<8x32xf32>
    %c0_4 = arith.constant 0 : index
    %c0_5 = arith.constant 0 : index
    %5 = vector.load %arg6[%c0_4, %c0_5] : memref<1x32xf32, #tpu.memory_space<vmem>>, vector<1x32xf32>
    %6 = vector.broadcast %5 : vector<1x32xf32> to vector<8x32xf32>
    %7 = arith.addf %4, %6 : vector<8x32xf32>
    %cst_6 = arith.constant 0.176776692 : f32
    %8 = vector.broadcast %cst_6 : f32 to vector<8x32xf32>
    %9 = arith.mulf %7, %8 : vector<8x32xf32>
    %10 = arith.truncf %9 : vector<8x32xf32> to vector<8x32xbf16>
    %11 = vector.extract_strided_slice %10 {offsets = [0, 0], sizes = [8, 16], strides = [1, 1]} : vector<8x32xbf16> to vector<8x16xbf16>
    %c0_7 = arith.constant 0 : index
    %c0_8 = arith.constant 0 : index
    %c0_9 = arith.constant 0 : index
    %c0_10 = arith.constant 0 : index
    %12 = vector.load %arg3[%c0_7, %c0_8, %c0_9, %c0_10] : memref<2x1x8x16xbf16, #tpu.memory_space<vmem>>, vector<1x1x8x16xbf16>
    %13 = vector.shape_cast %12 : vector<1x1x8x16xbf16> to vector<8x16xbf16>
    %c0_11 = arith.constant 0 : index
    %c0_12 = arith.constant 0 : index
    %c0_13 = arith.constant 0 : index
    %c0_14 = arith.constant 0 : index
    %14 = vector.load %arg4[%c0_11, %c0_12, %c0_13, %c0_14] : memref<2x1x8x16xbf16, #tpu.memory_space<vmem>>, vector<1x1x8x16xbf16>
    %15 = vector.shape_cast %14 : vector<1x1x8x16xbf16> to vector<8x16xbf16>
    %cst_15 = arith.constant dense<0.000000e+00> : vector<8x8xf32>
    %16 = tpu.matmul %11, %13, %cst_15 {dimension_numbers = #tpu.dot_dimension_numbers<[1], [1], [0], [0], [0, 0, 1, 0], [], []>} : vector<8x16xbf16>, vector<8x16xbf16>, vector<8x8xf32> -> vector<8x8xf32>
    %cst_16 = arith.constant dense<0xFF800000> : vector<8xf32>
    %17 = vector.multi_reduction <maximumf>, %16, %cst_16 [1] : vector<8x8xf32> to vector<8xf32>
    %18 = vector.shape_cast %17 : vector<8xf32> to vector<8x1xf32>
    %19 = vector.broadcast %18 : vector<8x1xf32> to vector<8x8xf32>
    %20 = arith.subf %16, %19 : vector<8x8xf32>
    %21 = math.exp %20 : vector<8x8xf32>
    %cst_17 = arith.constant dense<0.000000e+00> : vector<8xf32>
    %22 = vector.multi_reduction <add>, %21, %cst_17 [1] : vector<8x8xf32> to vector<8xf32>
    %23 = vector.shape_cast %22 : vector<8xf32> to vector<8x1xf32>
    %24 = tpu.reciprocal %23 {approx = true} : vector<8x1xf32> -> vector<8x1xf32>
    %25 = vector.broadcast %24 : vector<8x1xf32> to vector<8x8xf32>
    %26 = arith.mulf %21, %25 : vector<8x8xf32>
    %27 = arith.truncf %26 : vector<8x8xf32> to vector<8x8xbf16>
    %c0_18 = arith.constant 0 : index
    %c0_19 = arith.constant 0 : index
    %c0_20 = arith.constant 0 : index
    %c0_21 = arith.constant 0 : index
    %28 = vector.load %arg10[%c0_18, %c0_19, %c0_20, %c0_21] : memref<2x1x8x8xbf16, #tpu.memory_space<vmem>>, vector<1x1x8x8xbf16>
    %29 = vector.shape_cast %28 : vector<1x1x8x8xbf16> to vector<8x8xbf16>
    %30 = vector.shape_cast %27 : vector<8x8xbf16> to vector<1x1x8x8xbf16>
    tpu.vector_store %arg10[%c0_18, %c0_19, %c0_20, %c0_21], %30 {strides = array<i32>} : memref<2x1x8x8xbf16, #tpu.memory_space<vmem>>, vector<1x1x8x8xbf16>,
    %cst_22 = arith.constant dense<0.000000e+00> : vector<8x16xf32>
    %31 = tpu.matmul %27, %15, %cst_22 {dimension_numbers = #tpu.dot_dimension_numbers<[1], [0], [0], [1], [0, 0, 1, 1], [], []>} : vector<8x8xbf16>, vector<8x16xbf16>, vector<8x16xf32> -> vector<8x16xf32>
    %32 = vector.extract_strided_slice %10 {offsets = [0, 16], sizes = [8, 16], strides = [1, 1]} : vector<8x32xbf16> to vector<8x16xbf16>
    %c1 = arith.constant 1 : index
    %c0_23 = arith.constant 0 : index
    %c0_24 = arith.constant 0 : index
    %c0_25 = arith.constant 0 : index
    %33 = vector.load %arg3[%c1, %c0_23, %c0_24, %c0_25] : memref<2x1x8x16xbf16, #tpu.memory_space<vmem>>, vector<1x1x8x16xbf16>
    %34 = vector.shape_cast %33 : vector<1x1x8x16xbf16> to vector<8x16xbf16>
    %c1_26 = arith.constant 1 : index
    %c0_27 = arith.constant 0 : index
    %c0_28 = arith.constant 0 : index
    %c0_29 = arith.constant 0 : index
    %35 = vector.load %arg4[%c1_26, %c0_27, %c0_28, %c0_29] : memref<2x1x8x16xbf16, #tpu.memory_space<vmem>>, vector<1x1x8x16xbf16>
    %36 = vector.shape_cast %35 : vector<1x1x8x16xbf16> to vector<8x16xbf16>
    %cst_30 = arith.constant dense<0.000000e+00> : vector<8x8xf32>
    %37 = tpu.matmul %32, %34, %cst_30 {dimension_numbers = #tpu.dot_dimension_numbers<[1], [1], [0], [0], [0, 0, 1, 0], [], []>} : vector<8x16xbf16>, vector<8x16xbf16>, vector<8x8xf32> -> vector<8x8xf32>
    %cst_31 = arith.constant dense<0xFF800000> : vector<8xf32>
    %38 = vector.multi_reduction <maximumf>, %37, %cst_31 [1] : vector<8x8xf32> to vector<8xf32>
    %39 = vector.shape_cast %38 : vector<8xf32> to vector<8x1xf32>
    %40 = vector.broadcast %39 : vector<8x1xf32> to vector<8x8xf32>
    %41 = arith.subf %37, %40 : vector<8x8xf32>
    %42 = math.exp %41 : vector<8x8xf32>
    %cst_32 = arith.constant dense<0.000000e+00> : vector<8xf32>
    %43 = vector.multi_reduction <add>, %42, %cst_32 [1] : vector<8x8xf32> to vector<8xf32>
    %44 = vector.shape_cast %43 : vector<8xf32> to vector<8x1xf32>
    %45 = tpu.reciprocal %44 {approx = true} : vector<8x1xf32> -> vector<8x1xf32>
    %46 = vector.broadcast %45 : vector<8x1xf32> to vector<8x8xf32>
    %47 = arith.mulf %42, %46 : vector<8x8xf32>
    %48 = arith.truncf %47 : vector<8x8xf32> to vector<8x8xbf16>
    %c1_33 = arith.constant 1 : index
    %c0_34 = arith.constant 0 : index
    %c0_35 = arith.constant 0 : index
    %c0_36 = arith.constant 0 : index
    %49 = vector.load %arg10[%c1_33, %c0_34, %c0_35, %c0_36] : memref<2x1x8x8xbf16, #tpu.memory_space<vmem>>, vector<1x1x8x8xbf16>
    %50 = vector.shape_cast %49 : vector<1x1x8x8xbf16> to vector<8x8xbf16>
    %51 = vector.shape_cast %48 : vector<8x8xbf16> to vector<1x1x8x8xbf16>
    tpu.vector_store %arg10[%c1_33, %c0_34, %c0_35, %c0_36], %51 {strides = array<i32>} : memref<2x1x8x8xbf16, #tpu.memory_space<vmem>>, vector<1x1x8x8xbf16>,
    %cst_37 = arith.constant dense<0.000000e+00> : vector<8x16xf32>
    %52 = tpu.matmul %48, %36, %cst_37 {dimension_numbers = #tpu.dot_dimension_numbers<[1], [0], [0], [1], [0, 0, 1, 1], [], []>} : vector<8x8xbf16>, vector<8x16xbf16>, vector<8x16xf32> -> vector<8x16xf32>
    %53 = tpu.concatenate %31, %52 in 1 : vector<8x16xf32>, vector<8x16xf32> -> vector<8x32xf32>
    %54 = arith.truncf %53 : vector<8x32xf32> to vector<8x32xbf16>
    %c0_38 = arith.constant 0 : index
    %c0_39 = arith.constant 0 : index
    %55 = vector.load %arg7[%c0_38, %c0_39] : memref<32x32xbf16, #tpu.memory_space<vmem>>, vector<32x32xbf16>
    %cst_40 = arith.constant dense<0.000000e+00> : vector<8x32xf32>
    %56 = tpu.matmul %54, %55, %cst_40 {dimension_numbers = #tpu.dot_dimension_numbers<[1], [0], [0], [1], [0, 0, 1, 1], [], []>} : vector<8x32xbf16>, vector<32x32xbf16>, vector<8x32xf32> -> vector<8x32xf32>
    %57 = arith.addf %1, %56 : vector<8x32xf32>
    %c0_41 = arith.constant 0 : index
    %c0_42 = arith.constant 0 : index
    %58 = vector.load %arg8[%c0_41, %c0_42] : memref<1x32xf32, #tpu.memory_space<vmem>>, vector<1x32xf32>
    %59 = vector.broadcast %58 : vector<1x32xf32> to vector<8x32xf32>
    %60 = arith.addf %57, %59 : vector<8x32xf32>
    %c0_43 = arith.constant 0 : index
    %c0_44 = arith.constant 0 : index
    %c0_45 = arith.constant 0 : index
    %61 = vector.load %arg9[%c0_43, %c0_44, %c0_45] : memref<1x8x32xf32, #tpu.memory_space<vmem>>, vector<1x8x32xf32>
    %62 = vector.shape_cast %61 : vector<1x8x32xf32> to vector<8x32xf32>
    %63 = vector.shape_cast %60 : vector<8x32xf32> to vector<1x8x32xf32>
    tpu.vector_store %arg9[%c0_43, %c0_44, %c0_45], %63 {strides = array<i32>} : memref<1x8x32xf32, #tpu.memory_space<vmem>>, vector<1x8x32xf32>,
    return
  }
  func.func @transform_0(%arg0: i32, %arg1: i32) -> (i32, i32, i32) {
    %c0_i32 = arith.constant 0 : i32
    %c0_i32_0 = arith.constant 0 : i32
    return %arg0, %arg1, %c0_i32 : i32, i32, i32
  }
  func.func @transform_1(%arg0: i32, %arg1: i32) -> (i32, i32, i32, i32) {
    %c0_i32 = arith.constant 0 : i32
    %c0_i32_0 = arith.constant 0 : i32
    %c0_i32_1 = arith.constant 0 : i32
    %c0_i32_2 = arith.constant 0 : i32
    return %c0_i32, %arg0, %c0_i32_0, %c0_i32_1 : i32, i32, i32, i32
  }
  func.func @transform_2(%arg0: i32, %arg1: i32) -> (i32, i32, i32, i32) {
    %c0_i32 = arith.constant 0 : i32
    %c0_i32_0 = arith.constant 0 : i32
    %c0_i32_1 = arith.constant 0 : i32
    %c0_i32_2 = arith.constant 0 : i32
    return %c0_i32, %arg0, %c0_i32_0, %c0_i32_1 : i32, i32, i32, i32
  }
  func.func @transform_3(%arg0: i32, %arg1: i32) -> (i32, i32) {
    %c0_i32 = arith.constant 0 : i32
    %c0_i32_0 = arith.constant 0 : i32
    %c0_i32_1 = arith.constant 0 : i32
    return %c0_i32, %c0_i32_0 : i32, i32
  }
  func.func @transform_4(%arg0: i32, %arg1: i32) -> (i32, i32) {
    %c0_i32 = arith.constant 0 : i32
    %c0_i32_0 = arith.constant 0 : i32
    %c0_i32_1 = arith.constant 0 : i32
    return %c0_i32, %c0_i32_0 : i32, i32
  }
  func.func @transform_5(%arg0: i32, %arg1: i32) -> (i32, i32) {
    %c0_i32 = arith.constant 0 : i32
    %c0_i32_0 = arith.constant 0 : i32
    %c0_i32_1 = arith.constant 0 : i32
    return %c0_i32, %c0_i32_0 : i32, i32
  }
  func.func @transform_6(%arg0: i32, %arg1: i32) -> (i32, i32) {
    %c0_i32 = arith.constant 0 : i32
    %c0_i32_0 = arith.constant 0 : i32
    %c0_i32_1 = arith.constant 0 : i32
    return %c0_i32, %c0_i32_0 : i32, i32
  }
  func.func @transform_7(%arg0: i32, %arg1: i32) -> (i32, i32, i32) {
    %c0_i32 = arith.constant 0 : i32
    %c0_i32_0 = arith.constant 0 : i32
    return %arg0, %arg1, %c0_i32 : i32, i32, i32
  }
  func.func @transform_8(%arg0: i32, %arg1: i32) -> (i32, i32, i32, i32) {
    %c0_i32 = arith.constant 0 : i32
    %c0_i32_0 = arith.constant 0 : i32
    %c0_i32_1 = arith.constant 0 : i32
    return %c0_i32, %arg0, %arg1, %c0_i32_0 : i32, i32, i32, i32
  }
}

</mosaic_0001>

<bundles_post_ra>
// kernel: tpu_custom_call.1
= control target key start
LH: loop header
LB: loop body
LE: loop exit
PB: predicated region body
PF: predicated region fallthrough
CT: control target
= control target key end

     0   :  { %s1934_s0 = inlined_call_operand.hbm [shape: f32[2,8,32], index: 0, kind: input, shape index: {}]   ;;  %s1935_s1 = inlined_call_operand.hbm [shape: bf16[2,2,8,16], index: 1, kind: input, shape index: {}]   ;;  %s1936_s2 = inlined_call_operand.hbm [shape: bf16[2,2,8,16], index: 2, kind: input, shape index: {}]   ;;  %s1937_s3 = inlined_call_operand.hbm [shape: bf16[32,32], index: 3, kind: input, shape index: {}]   ;;  %s1938_s4 = inlined_call_operand.vmem [shape: f32[1,32], index: 4, kind: input, shape index: {}]   ;;  %s1939_s5 = inlined_call_operand.vmem [shape: bf16[32,32], index: 5, kind: input, shape index: {}]   ;;  %s1940_s6 = inlined_call_operand.vmem [shape: f32[1,32], index: 6, kind: input, shape index: {}]   ;;  %s1941_s7 = inlined_call_operand.hbm [shape: f32[2,8,32], index: 7, kind: output, shape index: {0}]   ;;  %s1942_s8 = inlined_call_operand.hbm [shape: bf16[2,2,8,8], index: 8, kind: output, shape index: {1}]  }
   0x1   :  { %1966 = sst [smem:[#allocation24_spill]] %s1935_s1 }
   0x2   :  { %1967 = sst [smem:[#allocation25_spill]] %s1940_s6 }
   0x3   :  { %1968 = sst [smem:[#allocation26_spill]] %s1941_s7 }
   0x4   :  { %1969 = sst [smem:[#allocation27_spill]] %s1942_s8 }
   0x5   :  { %14 = vsyncpa [#allocation3], 0 }
   0x6   :  { %16 = vsyncpa [#allocation3 + $0x1], 0 }
   0x7   :  { %17 = vsyncpa [#allocation6], 0 }
   0x8   :  { %19 = vsyncpa [#allocation6 + $0x1], 0 }
   0x9   :  { %20 = vsyncpa [#allocation9], 0 }
   0xa   :  { %21 = vsyncpa [#allocation4], 0 }
   0xb   :  { %23 = vsyncpa [#allocation4 + $0x1], 0 }
   0xc   :  { %24 = vsyncpa [#allocation12], 0 }
   0xd   :  { %26 = vsyncpa [#allocation12 + $0x1], 0  ;;  %s1520_s27 = smov 0   ;;  %s1522_s28 = smov 0  }
   0xe   :  { %s1524_s29 = smov 0   ;;  %s1526_s30 = smov 0  }
   0xf   :  { %s1528_s9 = smov 0   ;;  %s1530_s10 = smov 0  }
  0x10 LB: > { %1970 = sst [smem:[#allocation18_spill]] %s1437_s27  ;;  %s44_s11 = sadd.s32 1, %s1453_s9  ;;  %s1457_s10 = sphi %s1530_s10, %s32_s10   ;;  %s1453_s9 = sphi %s1528_s9, %s2006_s9   ;;  %s1449_s30 = sphi %s1526_s30, %s2005_s30   ;;  %s1445_s29 = sphi %s1524_s29, %s2009_s29   ;;  %s1441_s28 = sphi %s1522_s28, %s2008_s28   ;;  %s1437_s27 = sphi %s1520_s27, %s2007_s27  }
  0x11   : > { %1971 = sst [smem:[#allocation19_spill]] %s1453_s9  ;;  %s53_s12 = sadd.s32 1, %s1445_s29 }
  0x12   : > { %1972 = sst [smem:[#allocation20_spill]] %s1457_s10  ;;  %p46_p0 = scmp.ge.s32.totalorder %s44_s11, 2 }
  0x13   : > { %p1944_p1 = scmp.ne.s32.totalorder %s1445_s29, %s1441_s28  ;;  %p61_p2 = scmp.eq.s32.totalorder %s1457_s10, 0 }
  0x14   : > { %s2011_s11 = smov (%p46_p0, %s44_s11), 0  ;;  %p1143_p6 = scmp.lt.s32.totalorder %s1457_s10, 2 }
  0x15   : > { %1973 = sst [smem:[#allocation21_spill]] %s2011_s11  ;;  %p62_p3 = por %p61_p2, %p1944_p1 }
  0x16   : > { %s48_s13 = ssub.s32 %s1453_s9, %s2011_s11  ;;  %s1943_s14 = sand.u32 1, %s1445_s29  }
  0x17   : > { %p51_p5 = scmp.eq.s32.totalorder %s48_s13, 0  ;;  %s323_s15 = sand.u32 1, %s1457_s10  }
  0x18   : > { %s1571_s17 = sshll.u32 %s1943_s14, 3  ;;  %p1573_p7 = pnand %p1143_p6, %p62_p3 }
  0x19   : > { %s1567_s16 = scalar_select %p51_p5, %s1445_s29, %s53_s12  }
  0x1a   : > { %s1975_s18 = scalar_select %p1573_p7, 1, 0 }
  0x1b   : > { %1974 = sst [smem:[#allocation22_spill]] %s1567_s16  ;;  %s1022_s19 = sshll.u32 %s1453_s9, 6 }
  0x1c   : > { %s1976_s1 = sld [smem:[#allocation24_spill]]  ;;  %s327_s23 = scalar_lea.vmem [#allocation5], %s1571_s17 }
  0x1d   : > { %s333_s24 = sshll.u32 %s327_s23, 4  ;;  %s1588_s25 = scalar_lea.sflag [#allocation6], %s323_s15  ;;  %s1586_s24 = int_to_ptr.vmem [resolvable:$true] %s333_s24 }
  0x1e   : > { %p1594_p9 = pneg %p1573_p7 }
  0x20   : > { %s1977_s12 = scalar_select %p1594_p9, 1, 0 }
  0x22   : > { %s1583_s22 = scalar_lea.hbm %s1976_s1, %s1022_s19  ;;  %s1222_s21 = scalar_lea.hbm %s1976_s1, 256 }
  0x23   : > { %s1217_s26 = scalar_lea.hbm %s1583_s22, 128  ;;  %p1223_p12 = scmp.lt.u32.totalorder %s1583_s22, %s1976_s1 }
  0x24   : > { %p1218_p8 = scmp.ne.s32.totalorder %s1583_s22, %s1217_s26  ;;  %p1224_p13 = scmp.lt.u32.totalorder %s1222_s21, %s1217_s26 }
  0x25   : > { %p1226_p2 = scmp.lt.u32.totalorder %s1217_s26, %s1583_s22 }
  0x26   : > { %p1220_p10 = pnand %p1594_p9, %p1218_p8  ;;  %p1225_p0 = por %p1224_p13, %p1223_p12 }
  0x28   : > { %p1221_p11 = pneg %p1220_p10  ;;  %p1227_p3 = por %p1226_p2, %p1225_p0 }
  0x2a   : > { %p1228_p5 = pnand %p1227_p3, %p1221_p11 }
  0x2c   : > { %1231 = shalt.err (!%p1228_p5)
}
  0x2d   : > { %s1232_s15 = scalar_lea.vmem %s1586_s24, 128  ;;  %s1459_s13 = smov [#allocation5]  }
  0x2e   : > { %p1233_p6 = scmp.ne.s32.totalorder %s1586_s24, %s1232_s15  ;;  %s1237_s20 = sshll.u32 %s1459_s13, 4  ;;  %s1238_s20 = int_to_ptr.vmem [resolvable:$false] %s1237_s20 }
  0x2f   : > { %s1239_s14 = scalar_lea.vmem %s1238_s20, 256  ;;  %p1240_p4 = scmp.lt.s32.totalorder %s1586_s24, %s1238_s20 }
  0x30   : > { %p1235_p8 = pnand %p1233_p6, %p1594_p9  ;;  %p1241_p1 = scmp.lt.s32.totalorder %s1239_s14, %s1232_s15 }
  0x32   : > { %p1236_p10 = pneg %p1235_p8  ;;  %p1242_p12 = por %p1241_p1, %p1240_p4 }
  0x34   : > { %p1243_p13 = pnand %p1242_p12, %p1236_p10 }
  0x36   : > { %1246 = shalt.err (!%p1243_p13)
}
  0x37   : > { %s1945_s26 = smov 128   ;;  %s1946_s21 = smov 64  }
  0x38   : > { %s1948_s23 = smov 4   ;;  %s1626_s20 = scalar_lea.hbm %s1936_s2, %s1022_s19 }
  0x39   : > { %1131 = dma.hbm_to_vmem [thread:$0]  (!%p1573_p7), %s1583_s22, 128, %s1586_s24, %s1588_s25, %s1945_s26, %s1946_s21, %s1948_s23  }
  0x3a   : > { %s1629_s14 = sadd.s32 4294967295, %s1457_s10   ;;  %s1015_s1 = sadd.s32 4294967294, %s1457_s10  }
  0x3b   : > { %p66_p1 = scmp.ne.s32.totalorder %s1441_s28, %s1437_s27  ;;  %p1958_p4 = scmp.eq.s32.totalorder %s1629_s14, 0 }
  0x3c   : > { %p228_p11 = scmp.eq.s32.totalorder %s1629_s14, 1  ;;  %p234_p0 = scmp.eq.s32.totalorder %s1015_s1, 1 }
  0x3d   : > { %p1016_p2 = scmp.ge.s32.totalorder %s1457_s10, 1  ;;  %p1639_p3 = por %p1958_p4, %p66_p1 }
  0x3e   : > { %p1979_p5 = scmp.ne.s32.totalorder %s1445_s29, %s1441_s28  ;;  %p1650_p8 = por %p234_p0, %p66_p1 }
  0x3f   : > { %s1978_s22 = scalar_select %p1639_p3, 1, 0 }
  0x40   : > { %p1646_p6 = por %p228_p11, %p1979_p5  ;;  %p269_p10 = scmp.lt.s32.totalorder %s1457_s10, 3 }
  0x41   : > { %s1981_s24 = scalar_select %p1650_p8, 1, 0 }
  0x42   : > { %s1980_s19 = scalar_select %p1646_p6, 1, 0 }
  0x43   : > { %1982 = sst [smem:[#allocation23_spill]] %s1981_s24  ;;  %p1655_p12 = pnand %p1016_p2, %p269_p10 }
  0x44   : > { %s1463_s1 = smov [#allocation8]   ;;  %s1020_s26 = sshll.u32 %s1453_s9, 7 }
  0x45   : > { %s1983_s15 = scalar_select %p1655_p12, 1, 0 }
  0x46   : > { %s281_s13 = sshll.u32 %s1463_s1, 4  ;;  %p1121_p13 = pneg %p1655_p12  ;;  %s1659_s13 = int_to_ptr.vmem [resolvable:$true] %s281_s13 }
  0x47   : > { %s308_s21 = scalar_lea.vmem [#allocation2], %s1571_s17  ;;  %s1674_s24 = scalar_lea.hbm %s1934_s0, %s1020_s26 }
  0x48   : > { %s316_s23 = sshll.u32 %s308_s21, 4  ;;  %p1667_p1 = pnand %p1121_p13, %p1958_p4  ;;  %s1676_s23 = int_to_ptr.vmem [resolvable:$true] %s316_s23 }
  0x49   : > { %s347_s1 = scalar_lea.vmem [#allocation7], %s1571_s17  ;;  %s1247_s21 = scalar_lea.hbm %s1937_s3, 256 }
  0x4a   : > { %s1679_s27 = sshll.u32 %s347_s1, 4  ;;  %p1248_p11 = scmp.ne.s32.totalorder %s1937_s3, %s1247_s21  ;;  %s1729_s27 = int_to_ptr.vmem [resolvable:$true] %s1679_s27 }
  0x4b   : > { %p1249_p0 = pneg %p1667_p1  ;;  %p1254_p10 = scmp.lt.u32.totalorder %s1247_s21, %s1937_s3 }
  0x4d   : > { %p1250_p2 = pnand %p1249_p0, %p1248_p11 }
  0x4f   : > { %p1251_p5 = pneg %p1250_p2 }
  0x51   : > { %p1256_p13 = pnand %p1254_p10, %p1251_p5 }
  0x53   : > { %1259 = shalt.err (!%p1256_p13)
}
  0x54   : > { %s1260_s17 = scalar_lea.vmem %s1659_s13, 256  ;;  %p1268_p3 = scmp.lt.s32.totalorder %s1659_s13, %s1659_s13 }
  0x55   : > { %p1261_p4 = scmp.ne.s32.totalorder %s1659_s13, %s1260_s17  ;;  %p1269_p12 = scmp.lt.s32.totalorder %s1260_s17, %s1260_s17 }
  0x57   : > { %p1263_p8 = pnand %p1261_p4, %p1249_p0  ;;  %p1270_p7 = por %p1269_p12, %p1268_p3 }
  0x59   : > { %p1264_p6 = pneg %p1263_p8 }
  0x5b   : > { %p1271_p9 = pnand %p1270_p7, %p1264_p6 }
  0x5d   : > { %1274 = shalt.err (!%p1271_p9)
}
  0x5e   : > { %s1985_s6 = smov 4   ;;  %s1986_s7 = smov 64  }
  0x5f   : > { %1124 = dma.hbm_to_vmem [thread:$0]  (!%p1667_p1), %s1937_s3, 256, %s1659_s13, [#allocation9], %s1986_s7, %s1986_s7, %s1985_s6  }
  0x60   : > { %s1987_s26 = sand.u32 1, %s1445_s29   ;;  %s1275_s21 = scalar_lea.hbm %s1674_s24, 128 }
  0x61   : > { %s305_s1 = scalar_lea.sflag [#allocation3], %s1987_s26  ;;  %p1276_p7 = scmp.ne.s32.totalorder %s1674_s24, %s1275_s21 }
  0x62   : > { %p1988_p9 = scmp.ne.s32.totalorder %s1977_s12, 0  ;;  %s1280_s16 = scalar_lea.hbm %s1934_s0, 256 }
  0x63   : > { %p1281_p6 = scmp.lt.u32.totalorder %s1674_s24, %s1934_s0  ;;  %p1282_p8 = scmp.lt.u32.totalorder %s1280_s16, %s1275_s21 }
  0x64   : > { %p1278_p4 = pnand %p1276_p7, %p1988_p9  ;;  %p1284_p11 = scmp.lt.u32.totalorder %s1275_s21, %s1674_s24 }
  0x65   : > { %p1283_p12 = por %p1282_p8, %p1281_p6 }
  0x66   : > { %p1279_p3 = pneg %p1278_p4 }
  0x67   : > { %p1285_p0 = por %p1284_p11, %p1283_p12 }
  0x69   : > { %p1286_p1 = pnand %p1285_p0, %p1279_p3 }
  0x6b   : > { %1289 = shalt.err (!%p1286_p1)
}
  0x6c   : > { %s1290_s13 = scalar_lea.vmem %s1676_s23, 128  ;;  %s1464_s9 = smov [#allocation2]  }
  0x6d   : > { %p1291_p2 = scmp.ne.s32.totalorder %s1676_s23, %s1290_s13  ;;  %s1295_s26 = sshll.u32 %s1464_s9, 4  ;;  %s1296_s26 = int_to_ptr.vmem [resolvable:$false] %s1295_s26 }
  0x6e   : > { %s1297_s11 = scalar_lea.vmem %s1296_s26, 256  ;;  %p1298_p13 = scmp.lt.s32.totalorder %s1676_s23, %s1296_s26 }
  0x6f   : > { %p1293_p5 = pnand %p1291_p2, %p1988_p9  ;;  %p1299_p7 = scmp.lt.s32.totalorder %s1297_s11, %s1290_s13 }
  0x71   : > { %p1294_p10 = pneg %p1293_p5  ;;  %p1300_p4 = por %p1299_p7, %p1298_p13 }
  0x73   : > { %p1301_p6 = pnand %p1300_p4, %p1294_p10 }
  0x75   : > { %1304 = shalt.err (!%p1301_p6)
}
  0x76   : > { %p1989_p3 = scmp.ne.s32.totalorder %s1975_s18, 0  ;;  %s1305_s21 = scalar_lea.hbm %s1626_s20, 128 }
  0x77   : > { %p1306_p8 = scmp.ne.s32.totalorder %s1626_s20, %s1305_s21  ;;  %s1310_s17 = scalar_lea.hbm %s1936_s2, 256 }
  0x78   : > { %1128 = dma.hbm_to_vmem [thread:$0]  (!%p1989_p3), %s1674_s24, 128, %s1676_s23, %s305_s1  }
  0x79   : > { %p1308_p12 = pnand %p1306_p8, %p1988_p9  ;;  %p1311_p0 = scmp.lt.u32.totalorder %s1626_s20, %s1936_s2 }
  0x7a   : > { %p1312_p1 = scmp.lt.u32.totalorder %s1310_s17, %s1305_s21  ;;  %p1314_p5 = scmp.lt.u32.totalorder %s1305_s21, %s1626_s20 }
  0x7b   : > { %p1309_p11 = pneg %p1308_p12 }
  0x7c   : > { %p1313_p2 = por %p1312_p1, %p1311_p0 }
  0x7e   : > { %p1315_p10 = por %p1314_p5, %p1313_p2 }
  0x80   : > { %p1316_p13 = pnand %p1315_p10, %p1309_p11 }
  0x82   : > { %1319 = shalt.err (!%p1316_p13)
}
  0x83   : > { %s1320_s23 = scalar_lea.vmem %s1729_s27, 128  ;;  %s1465_s24 = smov [#allocation7]  }
  0x84   : > { %p1321_p7 = scmp.ne.s32.totalorder %s1729_s27, %s1320_s23  ;;  %s1325_s1 = sshll.u32 %s1465_s24, 4  ;;  %s1326_s1 = int_to_ptr.vmem [resolvable:$false] %s1325_s1 }
  0x85   : > { %s1327_s9 = scalar_lea.vmem %s1326_s1, 256  ;;  %p1328_p8 = scmp.lt.s32.totalorder %s1729_s27, %s1326_s1 }
  0x86   : > { %p1323_p4 = pnand %p1321_p7, %p1988_p9  ;;  %p1329_p12 = scmp.lt.s32.totalorder %s1327_s9, %s1320_s23 }
  0x88   : > { %p1324_p6 = pneg %p1323_p4  ;;  %p1330_p0 = por %p1329_p12, %p1328_p8 }
  0x8a   : > { %p1331_p1 = pnand %p1330_p0, %p1324_p6 }
  0x8c   : > { %1334 = shalt.err (!%p1331_p1)
}
  0x8d   : > { %s1990_s26 = smov 128   ;;  %p1991_p9 = scmp.ne.s32.totalorder %s1983_s15, 0 }
  0x8e   : > { %1134 = dma.hbm_to_vmem [thread:$0]  (!%p1989_p3), %s1626_s20, 128, %s1729_s27, %s1588_s25, %s1990_s26, %s1986_s7, %s1985_s6  }
  0x8f   : > { %365 = sbr.rel (%p1991_p9) target bundleno = 1588 (0x634), region = 48  ;;  %s1759_s12 = sand.u32 (!%p1991_p9), 1, %s1441_s28  }
  0x90   : > { %s1762_s11 = sshll.u32 (!%p1991_p9), %s1759_s12, 3  ;;  %s368_s18 = scalar_lea.sflag (!%p1991_p9), [#allocation3], %s1759_s12 }
  0x91   : > { %s371_s21 = scalar_lea.vmem (!%p1991_p9), [#allocation2], %s1762_s11  ;;  %p1992_p11 = scmp.ne.s32.totalorder (!%p1991_p9), %s1978_s22, 0 }
  0x96   : > { %1416 = dma.done.wait (%p1992_p11), %s368_s18, 128  }
  0x97   : > { %1418 = vsyncadd (%p1992_p11), %s368_s18, 4294967168  ;;  %s376_s27 = sand.u32 1, %s1629_s14   ;;  %s380_s20 = scalar_lea.vmem [#allocation5], %s1762_s11 }
  0x98   : > { %s377_s25 = scalar_lea.sflag [#allocation6], %s376_s27 }
  0x99   : > { %1420 = dma.done.wait (%p1992_p11), %s377_s25, 256  }
  0x9a   : > { %1422 = vsyncadd (%p1992_p11), %s377_s25, 4294967040  ;;  %s389_s15 = scalar_lea.vmem [#allocation7], %s1762_s11  ;;  %p1993_p3 = scmp.eq.s32.totalorder %s1629_s14, 0 }
  0x9c   : > { %1424 = dma.done.wait (%p1993_p3), [#allocation9], 256   ;;  %p1994_p2 = pmov %p1993_p3 }
  0x9d   : > { %v1466_v0 = vmov 0.0   ;;  %vm1467_vm0 = vmmov 0   ;;  %v1205_v1 = vld [vmem:[#allocation8] sm:$0xff]   ;;  %v1206_v2 = vld [vmem:[#allocation8 + $0x8] sm:$0xff]   ;;  %v1787_v3 = vld [vmem:[%s371_s21] sm:$0xff]  ;;  %vm467_vm1 = vcmask 261120  }
  0x9e   : > { %1426 = vsyncadd (%p1994_p2), [#allocation9], 4294967040  ;;  %1067 = vmatprep.subr.bf16.mxu0 %v1466_v0  ;;  %1071 = vmatprep.mubr.msk.bf16.mxu0 %vm1467_vm0, %v1466_v0  ;;  %v443_v4 = vpack.c.bf16 %v1787_v3, %v1787_v3  ;;  %v513_v5 = vld [vmem:[%s380_s20] sm:$0xf]  ;;  %vm515_vm2 = vcmask 130048   ;;  %s1468_s6 = smov 112  }
  0x9f   : > { %1075 = vmatprep.subr.bf16.mxu1 %v1466_v0  ;;  %1077 = vmatprep.mubr.msk.bf16.mxu1 %vm1467_vm0, %v1466_v0  ;;  %v520_v6 = vsel %vm515_vm2, %v513_v5, 0  ;;  %v1032_v7 = vld [vmem:[%s1938_s4] ss:$0 sm:$0xff]  ;;  %v1038_v12 = vld [vmem:[%s380_s20 + $0x4] sm:$0xf]  ;;  %vm562_vm3 = vcmask 64512  }
  0xa0   : > { %1068 = vmatpush3.bf16.msra.mxu0 %v1205_v1  ;;  %1076 = vmatpush3.bf16.xpose.msra.mxu1 %v520_v6  ;;  %v635_v16 = vsel %vm515_vm2, %v1038_v12, 0  ;;  %v514_v33 = vld [vmem:[%s389_s15] sm:$0xf]  ;;  %vm580_vm4 = vcmask 1043456   ;;  %v1039_v42 = vld [vmem:[%s389_s15 + $0x4] sm:$0xf] }
  0xa1   : > { %1069 = vmatprep.subr.bf16.mxu0 %v1466_v0  ;;  %1087 = vmatprep.subr.bf16.mxu1 %v1466_v0  ;;  %v582_v34 = vsel %vm580_vm4, %v514_v33, 0  ;;  %vm575_vm5 = vcmask 60416   ;;  %v695_v45 = vsel %vm580_vm4, %v1039_v42, 0  ;;  %s1826_s7 = scalar_lea.vmem [#allocation11], %s1762_s11  ;;  %v1207_v50 = vld [vmem:[%s1939_s5] sm:$0xff]   ;;  %v1208_v51 = vld [vmem:[%s1939_s5 + $0x8] sm:$0xff]  }
  0xa2   : > { %s1469_s13 = smov 16   ;;  %s1050_s23 = sshll.u32 %s1449_s30, 6 }
  0xa3   : > { %s845_s24 = sshll.u32 %s1826_s7, 4  ;;  %s1995_s26 = sld [smem:[#allocation27_spill]]  ;;  %s1849_s24 = int_to_ptr.vmem [resolvable:$true] %s845_s24 }
  0xa4   : > { %1070 = vmatpush3.bf16.msra.mxu0 %v1206_v2  ;;  %s818_s21 = scalar_lea.sflag [#allocation12], %s1759_s12  ;;  %s1335_s27 = scalar_lea.vmem %s1849_s24, 128 }
  0xa5   : > { %1081 = vmatprep.subr.bf16.mxu0 %v1466_v0  ;;  %p1336_p5 = scmp.ne.s32.totalorder %s1849_s24, %s1335_s27  ;;  %p1996_p10 = scmp.ne.s32.totalorder %s1980_s19, 0 }
  0xa6   : > { %s1470_s25 = smov [#allocation11]  }
  0xa7   : > { %1072 = vmatmul.mubr.msk.bf16.vlgmr.msra.gmra.mrb[0].mxu0 %vm467_vm1, %v443_v4  ;;  %p1337_p13 = pnand %p1336_p5, %p1996_p10  ;;  %s1339_s20 = sshll.u32 %s1470_s25, 4  ;;  %s1340_s20 = int_to_ptr.vmem [resolvable:$false] %s1339_s20 }
  0xa8   : > { %1083 = vmatprep.mubr.msk.bf16.mxu0 %vm1467_vm0, %v1466_v0  ;;  %1082 = vmatpush3.bf16.msra.mxu0 %v582_v34  ;;  %s1341_s15 = scalar_lea.vmem %s1340_s20, 256  ;;  %p1342_p4 = scmp.lt.s32.totalorder %s1849_s24, %s1340_s20 }
  0xa9   : > { %1093 = vmatprep.subr.bf16.mxu0 %v1466_v0  ;;  %s1847_s18 = scalar_lea.hbm %s1995_s26, %s1050_s23  ;;  %p1338_p7 = pneg %p1337_p13 }
  0xaa   : > { %p1343_p6 = scmp.lt.s32.totalorder %s1341_s15, %s1335_s27 }
  0xac   : > { %p1344_p8 = por %p1343_p6, %p1342_p4 }
  0xae   : > { %p1345_p12 = pnand %p1344_p8, %p1338_p7 }
 0x17a   : > { %v505_v8 = vpop.f32.mrb[0].mxu0 }
 0x17b   : > { %v506_v9 = vadd.f32 %v1032_v7, %v505_v8  ;;  %v1073_v10 = vpop.f32.mrb[1].mxu0 }
 0x17c   : > { %v508_v11 = vpop.f32.mrb[2].mxu0 }
 0x17d   : > { %v511_v13 = vmul.f32 0.17677669, %v506_v9  ;;  %v1074_v14 = vpop.f32.mrb[3].mxu0 }
 0x17f   : > { %v512_v15 = vpack.c.bf16 %v511_v13, %v511_v13 }
 0x181   : > { %629 = vrot.lane.b32.xlu0 %v512_v15, %s1468_s6  ;;  %1078 = vmatmul.mubr.msk.bf16.vlgmr.msra.gmra.mrb[0].mxu1 %vm515_vm2, %v512_v15 }
 0x182   : > { %1088 = vmatpush3.bf16.xpose.msra.mxu1 %v635_v16  ;;  %1089 = vmatprep.mubr.msk.bf16.mxu1 %vm1467_vm0, %v1466_v0 }
 0x183   : > { %1099 = vmatprep.subr.bf16.mxu1 %v1466_v0 }
 0x1f3   : > { %v630_v17 = vpop.permute.xlu0 %629 }
 0x1f4   : > { %1090 = vmatmul.mubr.msk.bf16.vlgmr.msra.gmra.mrb[4].mxu1 %vm515_vm2, %v630_v17 }
 0x1f5   : > { %1103 = vmatprep.mubr.msk.bf16.mxu1 %vm1467_vm0, %v1466_v0  ;;  %1100 = vmatpush3.bf16.msra.mxu1 %v1207_v50 }
 0x1f6   : > { %1101 = vmatprep.subr.bf16.mxu1 %v1466_v0 }
 0x1f9   : > { %1102 = vmatpush3.bf16.msra.mxu1 %v1208_v51 }
 0x254   : > { %v556_v18 = vpop.f32.mrb[0].mxu1 }
 0x255   : > { %v1079_v19 = vpop.f32.mrb[1].mxu1  ;;  %v563_v20 = vsel %vm562_vm3, %v556_v18, -inf }
 0x256   : > { %564 = vmax.xlane.f32.xlu0 %v563_v20  ;;  %v559_v21 = vpop.f32.mrb[2].mxu1 }
 0x257   : > { %v1080_v22 = vpop.f32.mrb[3].mxu1 }
 0x2c7   : > { %v671_v23 = vpop.f32.mrb[4].mxu1 }
 0x2c8   : > { %v1091_v24 = vpop.f32.mrb[5].mxu1  ;;  %v677_v25 = vsel %vm562_vm3, %v671_v23, -inf }
 0x2c9   : > { %678 = vmax.xlane.f32.xlu1 %v677_v25  ;;  %v674_v26 = vpop.f32.mrb[6].mxu1 }
 0x2ca   : > { %v1092_v27 = vpop.f32.mrb[7].mxu1 }
 0x2e3   : > { %v565_v28 = vpop.xlane.xlu0 %564 }
 0x2e4   : > { %v566_v29 = vsub.f32 %v556_v18, %v565_v28 }
 0x2e6   : > { %v567_v30 = vmul.f32 1.442695, %v566_v29 }
 0x2e8   : > { %1209 = vpow2.f32 %v567_v30 }
 0x2f2   : > { %v1210_v31 = vpop.eup %1209 }
 0x2f3   : > { %v569_v32 = vsel %vm562_vm3, %v1210_v31, 0.0 }
 0x2f4   : > { %570 = vadd.xlane.f32.xlu1 %v569_v32 }
 0x356   : > { %v679_v35 = vpop.xlane.xlu1 %678 }
 0x357   : > { %v680_v36 = vsub.f32 %v671_v23, %v679_v35 }
 0x359   : > { %v681_v37 = vmul.f32 1.442695, %v680_v36 }
 0x35b   : > { %1211 = vpow2.f32 %v681_v37 }
 0x365   : > { %v1212_v38 = vpop.eup %1211 }
 0x366   : > { %v683_v39 = vsel %vm562_vm3, %v1212_v38, 0.0 }
 0x367   : > { %684 = vadd.xlane.f32.xlu1 %v683_v39 }
 0x381   : > { %v571_v40 = vpop.xlane.xlu1 %570 }
 0x382   : > { %1213 = vrcp.f32 %v571_v40 }
 0x38c   : > { %v1214_v41 = vpop.eup %1213 }
 0x38d   : > { %v573_v43 = vmul.f32 %v1214_v41, %v1210_v31 }
 0x38f   : > { %v574_v44 = vpack.c.bf16 %v573_v43, %v573_v43 }
 0x391   : > { %1084 = vmatmul.mubr.msk.bf16.vlgmr.msra.gmra.mrb[4].mxu0 %vm562_vm3, %v574_v44  ;;  %576 = vst.msk [vmem:[%s1826_s7] sm:$0xf] %vm575_vm5, %v574_v44 }
 0x392   : > { %1094 = vmatpush3.bf16.msra.mxu0 %v695_v45  ;;  %1095 = vmatprep.mubr.msk.bf16.mxu0 %vm1467_vm0, %v1466_v0 }
 0x3f4   : > { %v685_v46 = vpop.xlane.xlu1 %684 }
 0x3f5   : > { %1215 = vrcp.f32 %v685_v46 }
 0x3ff   : > { %v1216_v47 = vpop.eup %1215 }
 0x400   : > { %v687_v48 = vmul.f32 %v1216_v47, %v1212_v38 }
 0x402   : > { %v688_v49 = vpack.c.bf16 %v687_v48, %v687_v48 }
 0x404   : > { %1096 = vmatmul.mubr.msk.bf16.vlgmr.msra.gmra.mrb[8].mxu0 %vm562_vm3, %v688_v49  ;;  %1041 = vst.msk [vmem:[%s1826_s7 + $0x4] sm:$0xf] %vm575_vm5, %v688_v49 }
 0x464   : > { %v618_v52 = vpop.f32.mrb[4].mxu0 }
 0x465   : > { %v1085_v53 = vpop.f32.mrb[5].mxu0 }
 0x466   : > { %v621_v54 = vpop.f32.mrb[6].mxu0 }
 0x467   : > { %v1086_v55 = vpop.f32.mrb[7].mxu0 }
 0x4d7   : > { %v731_v56 = vpop.f32.mrb[8].mxu0 }
 0x4d8   : > { %738 = vrot.lane.b32.xlu1 %v731_v56, %s1469_s13  ;;  %v1097_v57 = vpop.f32.mrb[9].mxu0 }
 0x4d9   : > { %v734_v58 = vpop.f32.mrb[10].mxu0 }
 0x4da   : > { %v1098_v59 = vpop.f32.mrb[11].mxu0 }
 0x54a   : > { %v739_v60 = vpop.permute.xlu1 %738 }
 0x54b   : > { %v741_v61 = vsel %vm515_vm2, %v618_v52, %v739_v60 }
 0x54c   : > { %v742_v62 = vpack.c.bf16 %v741_v61, %v741_v61 }
 0x54e   : > { %1104 = vmatmul.mubr.msk.bf16.vlgmr.msra.gmra.mrb[8].mxu1 %vm467_vm1, %v742_v62 }
 0x54f   : > { %1348 = shalt.err (!%p1345_p12)
}
 0x550   : > { %s1349_s14 = scalar_lea.hbm %s1847_s18, 128  ;;  %s1353_s7 = scalar_lea.hbm %s1995_s26, 256 }
 0x551   : > { %p1350_p0 = scmp.ne.s32.totalorder %s1847_s18, %s1349_s14  ;;  %p1354_p11 = scmp.lt.u32.totalorder %s1847_s18, %s1995_s26 }
 0x552   : > { %p1355_p3 = scmp.lt.u32.totalorder %s1353_s7, %s1349_s14  ;;  %p1357_p5 = scmp.lt.u32.totalorder %s1349_s14, %s1847_s18 }
 0x553   : > { %p1351_p1 = pnand %p1350_p0, %p1996_p10 }
 0x554   : > { %p1356_p2 = por %p1355_p3, %p1354_p11 }
 0x555   : > { %p1352_p9 = pneg %p1351_p1 }
 0x556   : > { %p1358_p13 = por %p1357_p5, %p1356_p2 }
 0x558   : > { %p1359_p7 = pnand %p1358_p13, %p1352_p9 }
 0x55a   : > { %1362 = shalt.err (!%p1359_p7)
}
 0x55b   : > { %s1471_s17 = smov 64   ;;  %s1472_s8 = smov 128  }
 0x55c   : > { %s1473_s13 = smov 4   ;;  %s1997_s9 = sld [smem:[#allocation25_spill]] }
 0x55d   : > { %1118 = dma.vmem_to_hbm [thread:$0]  (%p1996_p10), %s1849_s24, 128, %s1847_s18, %s818_s21, %s1471_s17, %s1472_s8, %s1473_s13  }
 0x55e   : > { %s1049_s27 = sshll.u32 %s1449_s30, 7  ;;  %s433_s25 = scalar_lea.vmem [#allocation10], %s1762_s11 }
 0x55f   : > { %s832_s20 = sshll.u32 %s433_s25, 4  ;;  %s1998_s22 = sld [smem:[#allocation26_spill]]  ;;  %s1886_s20 = int_to_ptr.vmem [resolvable:$true] %s832_s20 }
 0x560   : > { %s813_s30 = scalar_lea.sflag [#allocation4], %s1759_s12  ;;  %s1363_s11 = scalar_lea.vmem %s1886_s20, 128 }
 0x561   : > { %p1364_p4 = scmp.ne.s32.totalorder %s1886_s20, %s1363_s11  ;;  %s1474_s24 = smov [#allocation10]  }
 0x562   : > { %v1046_v0 = vld [vmem:[%s1997_s9] ss:$0 sm:$0xff]  ;;  %s1367_s18 = sshll.u32 %s1474_s24, 4  ;;  %s1368_s18 = int_to_ptr.vmem [resolvable:$false] %s1367_s18 }
 0x563   : > { %p1365_p6 = pnand %p1364_p4, %p1996_p10  ;;  %s1369_s21 = scalar_lea.vmem %s1368_s18, 256 }
 0x564   : > { %p1370_p12 = scmp.lt.s32.totalorder %s1886_s20, %s1368_s18  ;;  %p1371_p0 = scmp.lt.s32.totalorder %s1369_s21, %s1363_s11 }
 0x565   : > { %s1884_s6 = scalar_lea.hbm %s1998_s22, %s1049_s27  ;;  %p1366_p8 = pneg %p1365_p6 }
 0x566   : > { %p1372_p1 = por %p1371_p0, %p1370_p12 }
 0x568   : > { %p1373_p9 = pnand %p1372_p1, %p1366_p8 }
 0x621   : > { %v796_v63 = vpop.f32.mrb[8].mxu1 }
 0x622   : > { %v802_v1 = vadd.f32 %v796_v63, %v1787_v3  ;;  %v1105_v2 = vpop.f32.mrb[9].mxu1 }
 0x623   : > { %v799_v4 = vpop.f32.mrb[10].mxu1 }
 0x624   : > { %v810_v5 = vadd.f32 %v1046_v0, %v802_v1  ;;  %v1106_v6 = vpop.f32.mrb[11].mxu1 }
 0x626   : > { %811 = vst.msk [vmem:[%s433_s25] sm:$0xff] %vm467_vm1, %v810_v5 }
 0x627   : > { %1376 = shalt.err (!%p1373_p9)
}
 0x628   : > { %s1377_s12 = scalar_lea.hbm %s1884_s6, 128  ;;  %s1381_s16 = scalar_lea.hbm %s1998_s22, 256 }
 0x629   : > { %p1378_p11 = scmp.ne.s32.totalorder %s1884_s6, %s1377_s12  ;;  %p1382_p5 = scmp.lt.u32.totalorder %s1884_s6, %s1998_s22 }
 0x62a   : > { %p1383_p13 = scmp.lt.u32.totalorder %s1381_s16, %s1377_s12  ;;  %p1385_p4 = scmp.lt.u32.totalorder %s1377_s12, %s1884_s6 }
 0x62b   : > { %p1379_p3 = pnand %p1378_p11, %p1996_p10 }
 0x62c   : > { %p1384_p7 = por %p1383_p13, %p1382_p5 }
 0x62d   : > { %p1380_p2 = pneg %p1379_p3 }
 0x62e   : > { %p1386_p6 = por %p1385_p4, %p1384_p7 }
 0x630   : > { %p1387_p8 = pnand %p1386_p6, %p1380_p2 }
 0x632   : > { %1390 = shalt.err (!%p1387_p8)
}
 0x633   : > { %1117 = dma.vmem_to_hbm [thread:$0]  (%p1996_p10), %s1886_s20, 128, %s1884_s6, %s813_s30  }
 0x634 PF: > { %s1999_s13 = sld [smem:[#allocation18_spill]]  ;;  %s2000_s23 = sld [smem:[#allocation23_spill]] }
 0x635   : > { %s2001_s1 = sld [smem:[#allocation20_spill]] }
 0x63a   : > { %s860_s9 = sand.u32 1, %s1999_s13   ;;  %p2002_p12 = scmp.ne.s32.totalorder %s2000_s23, 0 }
 0x63b   : > { %p2003_p0 = scmp.ge.s32.totalorder %s2001_s1, 2  ;;  %s861_s27 = scalar_lea.sflag [#allocation4], %s860_s9 }
 0x63d   : > { %p1136_p1 = pnand %p2003_p0, %p2002_p12 }
 0x63f   : > { %1428 = dma.done.wait (!%p1136_p1), %s861_s27, 128  }
 0x640   : > { %1430 = vsyncadd (!%p1136_p1), %s861_s27, 4294967168  ;;  %s870_s25 = scalar_lea.sflag [#allocation12], %s860_s9 }
 0x641   : > { %1432 = dma.done.wait (!%p1136_p1), %s870_s25, 128  }
 0x642   : > { %1434 = vsyncadd (!%p1136_p1), %s870_s25, 4294967168  ;;  %s32_s10 = sadd.s32 1, %s2001_s1   ;;  %s2004_s19 = sld [smem:[#allocation22_spill]] }
 0x643   : > { %p29_p9 = scmp.ge.s32.totalorder %s32_s10, 4   ;;  %s2005_s30 = sld [smem:[#allocation19_spill]] }
 0x644   : > { %s2006_s9 = sld [smem:[#allocation21_spill]]  ;;  %s2007_s27 = smov %s1441_s28 }
 0x645   : > { %s2008_s28 = smov %s1445_s29  ;;  %31 = sbr.rel (!%p29_p9) target bundleno = 16 (0x10), region = 141 }
 0x648   : > { %s2009_s29 = smov %s2004_s19 }
 0x64c   :  { %875 = vsyncpa [#allocation3], 1 }
 0x64d   :  { %877 = vsyncpa [#allocation3 + $0x1], 1 }
 0x64e   :  { %878 = vsyncpa [#allocation6], 1 }
 0x64f   :  { %880 = vsyncpa [#allocation6 + $0x1], 1 }
 0x650   :  { %881 = vsyncpa [#allocation9], 1 }
 0x651   :  { %882 = vsyncpa [#allocation4], 1 }
 0x652   :  { %884 = vsyncpa [#allocation4 + $0x1], 1 }
 0x653   :  { %885 = vsyncpa [#allocation12], 1 }
 0x654   :  { %887 = vsyncpa [#allocation12 + $0x1], 1 }

</bundles_post_ra>
